<compile_context>
chip_gen: v7x
topology: tpu7x:2x2x1
jax: 0.10.0
libtpu: 0.0.40
codegen_flags: <defaults>
</compile_context>

<pallas_src>
import functools
import numpy as np
import jax
import jax.numpy as jnp
from jax.experimental import pallas as pl
from jax.experimental.pallas import tpu as pltpu

_TM_PREF = 256           # batch-row tile (sublane axis); 256 fills the v6e/v7x 256-wide MXU
_TN_PREF = 512           # output-feature tile (lane axis, multiple of 128)
_VMEM_BUDGET = 24 << 20  # target for double-buffered tiles (safe on v7x's 64 MiB/TC)


def _round_up(x, m):
    return ((x + m - 1) // m) * m


def _vmem_needed_bytes(tm, tn, K, x_bytes=4, w_bytes=4):
    # Double-buffered x / w / bias input tiles + output tile (BlockSpec pipeline).
    return 2 * (tm * K * x_bytes + K * tn * w_bytes + tn * 4 + tm * tn * 4)


def _choose_tn(N, K):
    """Output-feature tile: multiple of 128 (lane-dense unmasked stores) unless N < 128."""
    if N <= 128:
        return N, N                                   # single full-dim block, no padding
    N_align = _round_up(N, 128)
    tn = min(_TN_PREF, N_align)
    # Guarantee >= 2 N tiles so both v7x TensorCores get work on the "parallel" axis.
    if N_align // tn < 2 and N_align >= 256:
        tn = max(128, (N_align // 2) // 128 * 128)
    # Keep double-buffered tiles under the VMEM budget (worst case tm = _TM_PREF).
    while tn > 128 and _vmem_needed_bytes(_TM_PREF, tn, K) > _VMEM_BUDGET:
        tn -= 128
    # TODO(synk): for extreme latent dims (K >> 10k) a K-tiled accumulator variant
    # would be needed; resident K covers realistic decoder latent sizes.
    return tn, _round_up(N, tn)


def prepare_decoder_params(weight, bias, *, weight_dtype=jnp.float32):
    """One-time parameter prep (outside the jit'd forward).

    Transposes the PyTorch [out, in] weight to [in, out] = [K, N], pads N to the
    tile-aligned N_p, and optionally casts to bf16 (halves weight HBM traffic;
    f32 accumulation keeps accuracy).
    """
    N, K = weight.shape
    _, N_p = _choose_tn(N, K)
    w_kn = jnp.asarray(weight).T                      # [K, N]
    b_row = jnp.asarray(bias, dtype=jnp.float32).reshape(1, N)
    if N_p != N:
        w_kn = jnp.pad(w_kn, ((0, 0), (0, N_p - N)))
        b_row = jnp.pad(b_row, ((0, 0), (0, N_p - N)))
    return w_kn.astype(weight_dtype), b_row


def _linear_bias_kernel(x_ref, w_ref, b_ref, o_ref):
    """One (tm, tn) output tile; K fully resident, no accumulator needed."""
    x = x_ref[...]
    if x.dtype != w_ref.dtype:
        x = x.astype(w_ref.dtype)        # bf16 weight path: cast code tile in VMEM
    o_ref[...] = (
        jnp.dot(x, w_ref[...], preferred_element_type=jnp.float32) + b_ref[...]
    ).astype(o_ref.dtype)


@functools.partial(jax.jit, static_argnames=("image_shape", "xla_fast_path"))
def reconstruction_decoder(code, w_kn, b_row, image_shape, xla_fast_path=False):
    """code: [B, K]; (w_kn, b_row) from prepare_decoder_params; returns [B, *image_shape] f32."""
    B, K = code.shape
    N = int(np.prod(image_shape))
    K_w, N_p = w_kn.shape
    assert K_w == K, "weight must be prepared as [in_features, out_features]"

    if xla_fast_path:
        # Degenerate tiny problems: a single fused XLA dot beats kernel launch + DMA.
        y = code.astype(jnp.float32) @ w_kn[:, :N].astype(jnp.float32) + b_row[0, :N]
        return y.reshape((-1,) + image_shape)

    tn, N_p_chk = _choose_tn(N, K)
    assert N_p_chk == N_p, "params were prepared for a different tile configuration"

    # Batch-row tile: full dim when small (no padding), else _TM_PREF-aligned.
    if B <= _TM_PREF:
        tm, B_p = B, B
    else:
        tm = _TM_PREF
        B_p = _round_up(B, tm)
    x = code if B_p == B else jnp.pad(code, ((0, B_p - B), (0, 0)))

    grid_n = N_p // tn
    grid_m = B_p // tm
    grid = (grid_n, grid_m)          # M innermost -> weight tile resident, streamed once

    x_b = x.dtype.itemsize
    w_b = w_kn.dtype.itemsize
    vmem_needed = _vmem_needed_bytes(tm, tn, K, x_b, w_b)
    vmem_limit = int(min(32 << 20, max(16 << 20, vmem_needed + (8 << 20))))

    flops = 2 * B_p * K * N_p
    bytes_accessed = int(
        K * N_p * w_b                  # weight: streamed from HBM exactly once
        + grid_n * B_p * K * x_b       # code: re-streamed once per N tile (tiny)
        + N_p * 4                      # bias
        + B_p * N_p * 4                # output
    )

    y = pl.pallas_call(
        _linear_bias_kernel,
        out_shape=jax.ShapeDtypeStruct((B_p, N_p), jnp.float32),
        grid=grid,
        in_specs=[
            pl.BlockSpec((tm, K), lambda j, i: (i, 0)),    # code   [B_p, K]
            pl.BlockSpec((K, tn), lambda j, i: (0, j)),    # weight [K, N_p] (resident over i)
            pl.BlockSpec((1, tn), lambda j, i: (0, j)),    # bias   [1, N_p]
        ],
        out_specs=pl.BlockSpec((tm, tn), lambda j, i: (i, j)),
        compiler_params=pltpu.CompilerParams(
            dimension_semantics=("parallel", "parallel"),
            vmem_limit_bytes=vmem_limit,
        ),
        cost_estimate=pl.CostEstimate(
            flops=flops, transcendentals=0, bytes_accessed=bytes_accessed),
    )(x, w_kn, b_row)

    if B_p != B or N_p != N:
        y = y[:B, :N]
    # view((-1,) + image_shape): pure metadata reshape, stays in plain JAX.
    return y.reshape((-1,) + image_shape)


if __name__ == "__main__":
    def run_case(B, in_features, image_shape, weight_dtype, key, rtol, atol):
        out_features = int(np.prod(image_shape))
        k_code, k_w, k_b = jax.random.split(key, 3)
        bound = 1.0 / np.sqrt(in_features)     # nn.Linear default init range
        weight = jax.random.uniform(k_w, (out_features, in_features),
                                    minval=-bound, maxval=bound, dtype=jnp.float32)
        bias = jax.random.uniform(k_b, (out_features,),
                                  minval=-bound, maxval=bound, dtype=jnp.float32)
        code = jax.random.normal(k_code, (B, in_features), dtype=jnp.float32)

        w_kn, b_row = prepare_decoder_params(weight, bias, weight_dtype=weight_dtype)
        out = reconstruction_decoder(code, w_kn, b_row, image_shape)
        out = jax.block_until_ready(out)

        # Reference (same dtype rounding as the kernel path, f32 accumulate).
        w_ref = weight.astype(weight_dtype).astype(jnp.float32)
        c_ref = code.astype(weight_dtype).astype(jnp.float32)
        ref = (c_ref @ w_ref.T + bias).reshape((-1,) + image_shape)
        np.testing.assert_allclose(np.asarray(out), np.asarray(ref), rtol=rtol, atol=atol)
        assert out.shape == (B,) + image_shape and out.dtype == jnp.float32

    key = jax.random.PRNGKey(0)
    k1, k2, k3 = jax.random.split(key, 3)

    # Small demo shape consistent with the module (grid (2,1): both v7x TCs get a tile).
    run_case(B=8, in_features=32, image_shape=(1, 16, 16),
             weight_dtype=jnp.float32, key=k1, rtol=1e-5, atol=1e-5)
    # Unaligned latent dim (K=48) + multi-tile N exercises the resident-K / padded-N path.
    run_case(B=64, in_features=48, image_shape=(3, 32, 32),
             weight_dtype=jnp.float32, key=k2, rtol=1e-5, atol=1e-5)
    # bf16 weight path (halved weight HBM traffic), f32 accumulation.
    run_case(B=16, in_features=32, image_shape=(1, 16, 16),
             weight_dtype=jnp.bfloat16, key=k3, rtol=1e-3, atol=1e-3)

    print("KERNEL_OK")
</pallas_src>

<mosaic_0001>
module attributes {stable_mosaic.version = 11 : i64} {
  func.func @_linear_bias_kernel(%arg0: i32, %arg1: i32, %arg2: memref<8x32xf32, #tpu.memory_space<vmem>>, %arg3: memref<32x128xf32, #tpu.memory_space<vmem>>, %arg4: memref<1x128xf32, #tpu.memory_space<vmem>>, %arg5: memref<8x128xf32, #tpu.memory_space<vmem>>) attributes {dimension_semantics = [#tpu.dimension_semantics<parallel>, #tpu.dimension_semantics<parallel>], iteration_bounds = array<i64: 2, 1>, scalar_prefetch = 0 : i64, scratch_operands = 0 : i64, tpu.core_type = #tpu.core_type<tc>, window_params = [{transform_indices = @transform_0, window_bounds = array<i64: 8, 32>}, {transform_indices = @transform_1, window_bounds = array<i64: 32, 128>}, {transform_indices = @transform_2, window_bounds = array<i64: 1, 128>}, {transform_indices = @transform_3, window_bounds = array<i64: 8, 128>}]} {
    %c0 = arith.constant 0 : index
    %c0_0 = arith.constant 0 : index
    %0 = vector.load %arg2[%c0, %c0_0] : memref<8x32xf32, #tpu.memory_space<vmem>>, vector<8x32xf32>
    %c0_1 = arith.constant 0 : index
    %c0_2 = arith.constant 0 : index
    %1 = vector.load %arg3[%c0_1, %c0_2] : memref<32x128xf32, #tpu.memory_space<vmem>>, vector<32x128xf32>
    %cst = arith.constant dense<0.000000e+00> : vector<8x128xf32>
    %2 = tpu.matmul %0, %1, %cst {dimension_numbers = #tpu.dot_dimension_numbers<[1], [0], [0], [1], [0, 0, 1, 1], [], []>} : vector<8x32xf32>, vector<32x128xf32>, vector<8x128xf32> -> vector<8x128xf32>
    %c0_3 = arith.constant 0 : index
    %c0_4 = arith.constant 0 : index
    %3 = vector.load %arg4[%c0_3, %c0_4] : memref<1x128xf32, #tpu.memory_space<vmem>>, vector<1x128xf32>
    %4 = vector.broadcast %3 : vector<1x128xf32> to vector<8x128xf32>
    %5 = arith.addf %2, %4 : vector<8x128xf32>
    %c0_5 = arith.constant 0 : index
    %c0_6 = arith.constant 0 : index
    %6 = vector.load %arg5[%c0_5, %c0_6] : memref<8x128xf32, #tpu.memory_space<vmem>>, vector<8x128xf32>
    tpu.vector_store %arg5[%c0_5, %c0_6], %5 {strides = array<i32>} : memref<8x128xf32, #tpu.memory_space<vmem>>, vector<8x128xf32>,
    return
  }
  func.func @transform_0(%arg0: i32, %arg1: i32) -> (i32, i32) {
    %c0_i32 = arith.constant 0 : i32
    %c0_i32_0 = arith.constant 0 : i32
    return %arg1, %c0_i32 : i32, i32
  }
  func.func @transform_1(%arg0: i32, %arg1: i32) -> (i32, i32) {
    %c0_i32 = arith.constant 0 : i32
    %c0_i32_0 = arith.constant 0 : i32
    return %c0_i32, %arg0 : i32, i32
  }
  func.func @transform_2(%arg0: i32, %arg1: i32) -> (i32, i32) {
    %c0_i32 = arith.constant 0 : i32
    %c0_i32_0 = arith.constant 0 : i32
    return %c0_i32, %arg0 : i32, i32
  }
  func.func @transform_3(%arg0: i32, %arg1: i32) -> (i32, i32) {
    %c0_i32 = arith.constant 0 : i32
    return %arg1, %arg0 : i32, i32
  }
}

</mosaic_0001>

<bundles_post_ra>
// kernel: reconstruction_decoder.1
= control target key start
LH: loop header
LB: loop body
LE: loop exit
PB: predicated region body
PF: predicated region fallthrough
CT: control target
= control target key end

     0   :  { %8 = vsyncpa [#allocation3], 0  ;;  %s861_s0 = inlined_call_operand.hbm [shape: f32[8,32], index: 0, kind: input, shape index: {}]   ;;  %s862_s1 = inlined_call_operand.hbm [shape: f32[32,256], index: 1, kind: input, shape index: {}]   ;;  %s863_s2 = inlined_call_operand.vmem [shape: f32[1,256], index: 2, kind: input, shape index: {}]   ;;  %s864_s3 = inlined_call_operand.vmem [shape: f32[8,256], index: 3, kind: output, shape index: {}]  }
   0x1   :  { %9 = vsyncpa [#allocation5], 0 }
   0x2   :  { %11 = vsyncpa [#allocation5 + $0x1], 0  ;;  %s694_s12 = smov 0   ;;  %s696_s13 = smov 0  }
   0x3   :  { %s698_s14 = smov 0   ;;  %s700_s15 = smov 0  }
   0x4   :  { %s702_s16 = smov 0   ;;  %s704_s17 = smov 0  }
   0x5 LB: > { %s443_s18 = sadd.s32 4294967295, %s664_s17   ;;  %s62_s19 = sadd.s32 1, %s652_s14  ;;  %s664_s17 = sphi %s704_s17, %s17_s17   ;;  %s660_s16 = sphi %s702_s16, %s883_s16   ;;  %s656_s15 = sphi %s700_s15, %s882_s15   ;;  %s652_s14 = sphi %s698_s14, %s881_s14   ;;  %s648_s13 = sphi %s696_s13, %s880_s13   ;;  %s644_s12 = sphi %s694_s12, %s879_s12  }
   0x6   : > { %p69_p0 = scmp.ne.s32.totalorder %s652_s14, %s648_s13  ;;  %p70_p1 = scmp.eq.s32.totalorder %s664_s17, 0 }
   0x7   : > { %p75_p2 = scmp.ne.s32.totalorder %s648_s13, %s644_s12  ;;  %p728_p3 = scmp.eq.s32.totalorder %s443_s18, 0 }
   0x8   : > { %p71_p4 = por %p70_p1, %p69_p0  ;;  %p445_p5 = scmp.ge.s32.totalorder %s664_s17, 1 }
   0x9   : > { %s870_s20 = scalar_select %p728_p3, 1, 0 }
   0xa   : > { %p735_p6 = por %p728_p3, %p75_p2  ;;  %p140_p7 = scmp.lt.s32.totalorder %s664_s17, 3 }
   0xb   : > { %s666_s23 = smov [#allocation2]   ;;  %p495_p10 = scmp.lt.s32.totalorder %s664_s17, 2 }
   0xc   : > { %s871_s21 = scalar_select %p735_p6, 1, 0 }
   0xd   : > { %p740_p8 = pnand %p445_p5, %p140_p7  ;;  %s155_s24 = sshll.u32 %s666_s23, 4  ;;  %s156_s24 = int_to_ptr.vmem [resolvable:$true] %s155_s24 }
   0xe   : > { %s166_s25 = sand.u32 1, %s652_s14   ;;  %p754_p12 = pnand %p495_p10, %p71_p4 }
   0xf   : > { %s872_s22 = scalar_select %p740_p8, 1, 0 }
  0x10   : > { %p486_p9 = pneg %p740_p8  ;;  %s552_s30 = scalar_lea.hbm %s861_s0, 128 }
  0x11   : > { %s874_s27 = scalar_select %p754_p12, 1, 0 }
  0x12   : > { %p750_p11 = pnand %p486_p9, %p728_p3  ;;  %p553_p13 = scmp.ne.s32.totalorder %s861_s0, %s552_s30 }
  0x13   : > { %p559_p5 = scmp.lt.u32.totalorder %s552_s30, %s861_s0 }
  0x14   : > { %p554_p0 = pneg %p750_p11 }
  0x16   : > { %p555_p1 = pnand %p554_p0, %p553_p13 }
  0x18   : > { %p556_p2 = pneg %p555_p1 }
  0x1a   : > { %p561_p4 = pnand %p559_p5, %p556_p2 }
  0x1c   : > { %564 = shalt.err (!%p561_p4)
}
  0x1d   : > { %s565_s8 = scalar_lea.vmem %s156_s24, 128  ;;  %p573_p6 = scmp.lt.s32.totalorder %s156_s24, %s156_s24 }
  0x1e   : > { %p566_p7 = scmp.ne.s32.totalorder %s156_s24, %s565_s8  ;;  %p574_p3 = scmp.lt.s32.totalorder %s565_s8, %s565_s8 }
  0x20   : > { %p568_p9 = pnand %p566_p7, %p554_p0  ;;  %p575_p8 = por %p574_p3, %p573_p6 }
  0x22   : > { %p569_p10 = pneg %p568_p9 }
  0x24   : > { %p576_p12 = pnand %p575_p8, %p569_p10 }
  0x26   : > { %579 = shalt.err (!%p576_p12)
}
  0x27   : > { %489 = dma.hbm_to_vmem [thread:$0]  (!%p750_p11), %s861_s0, 128, %s156_s24, [#allocation3]  }
  0x28   : > { %s29_s11 = sadd.s32 1, %s660_s16  ;;  %s448_s12 = sshll.u32 %s166_s25, 5 }
  0x29   : > { %p31_p3 = scmp.ge.s32.totalorder %s29_s11, 2  ;;  %s449_s18 = sshll.u32 %s660_s16, 7 }
  0x2a   : > { %s170_s23 = scalar_lea.vmem [#allocation4], %s448_s12  ;;  %s783_s30 = scalar_lea.hbm %s862_s1, %s449_s18 }
  0x2b   : > { %s176_s26 = sshll.u32 %s170_s23, 4  ;;  %s885_s11 = smov (%p31_p3, %s29_s11), 0  ;;  %s785_s26 = int_to_ptr.vmem [resolvable:$true] %s176_s26 }
  0x2c   : > { %s59_s24 = ssub.s32 %s660_s16, %s885_s11  ;;  %s796_s5 = scalar_lea.sflag [#allocation5], %s166_s25 }
  0x2d   : > { %p60_p6 = scmp.eq.s32.totalorder %s59_s24, 0  ;;  %s580_s6 = scalar_lea.hbm %s783_s30, 512 }
  0x2e   : > { %p581_p8 = scmp.ne.s32.totalorder %s783_s30, %s580_s6  ;;  %p875_p11 = scmp.ne.s32.totalorder %s874_s27, 0 }
  0x2f   : > { %s792_s4 = scalar_select %p60_p6, %s652_s14, %s62_s19  }
  0x30   : > { %p582_p12 = pneg %p875_p11  ;;  %s585_s9 = scalar_lea.hbm %s862_s1, 1024 }
  0x31   : > { %p586_p1 = scmp.lt.u32.totalorder %s783_s30, %s862_s1  ;;  %p587_p2 = scmp.lt.u32.totalorder %s585_s9, %s580_s6 }
  0x32   : > { %p583_p13 = pnand %p582_p12, %p581_p8  ;;  %p589_p4 = scmp.lt.u32.totalorder %s580_s6, %s783_s30 }
  0x33   : > { %p588_p5 = por %p587_p2, %p586_p1 }
  0x34   : > { %p584_p0 = pneg %p583_p13 }
  0x35   : > { %p590_p7 = por %p589_p4, %p588_p5 }
  0x37   : > { %p591_p9 = pnand %p590_p7, %p584_p0 }
  0x39   : > { %594 = shalt.err (!%p591_p9)
}
  0x3a   : > { %s595_s19 = scalar_lea.vmem %s785_s26, 512  ;;  %s667_s25 = smov [#allocation4]  }
  0x3b   : > { %p596_p10 = scmp.ne.s32.totalorder %s785_s26, %s595_s19  ;;  %s600_s18 = sshll.u32 %s667_s25, 4  ;;  %s601_s18 = int_to_ptr.vmem [resolvable:$false] %s600_s18 }
  0x3c   : > { %s602_s23 = scalar_lea.vmem %s601_s18, 1024  ;;  %p603_p8 = scmp.lt.s32.totalorder %s785_s26, %s601_s18 }
  0x3d   : > { %p598_p3 = pnand %p596_p10, %p582_p12  ;;  %p604_p13 = scmp.lt.s32.totalorder %s602_s23, %s595_s19 }
  0x3f   : > { %p599_p6 = pneg %p598_p3  ;;  %p605_p1 = por %p604_p13, %p603_p8 }
  0x41   : > { %p606_p2 = pnand %p605_p1, %p599_p6 }
  0x43   : > { %609 = shalt.err (!%p606_p2)
}
  0x44   : > { %s668_s28 = smov 256   ;;  %s669_s29 = smov 128  }
  0x45   : > { %s670_s24 = smov 8   ;;  %p876_p12 = scmp.ne.s32.totalorder %s872_s22, 0 }
  0x46   : > { %493 = dma.hbm_to_vmem [thread:$0]  (!%p875_p11), %s783_s30, 512, %s785_s26, %s796_s5, %s668_s28, %s669_s29, %s670_s24  }
  0x47   : > { %194 = sbr.rel (%p876_p12) target bundleno = 308 (0x134), region = 32  ;;  %p877_p0 = scmp.ne.s32.totalorder (!%p876_p12), %s870_s20, 0 }
  0x4e   : > { %635 = dma.done.wait (%p877_p0), [#allocation3], 128  }
  0x4f   : > { %637 = vsyncadd (%p877_p0), [#allocation3], 4294967168  ;;  %s200_s6 = sand.u32 1, %s648_s13   ;;  %p878_p5 = scmp.ne.s32.totalorder %s871_s21, 0 }
  0x50   : > { %s452_s7 = sshll.u32 %s200_s6, 5  ;;  %s201_s8 = scalar_lea.sflag [#allocation5], %s200_s6 }
  0x51   : > { %s204_s9 = scalar_lea.vmem [#allocation4], %s452_s7 }
  0x52   : > { %639 = dma.done.wait (%p878_p5), %s201_s8, 512  }
  0x53   : > { %641 = vsyncadd (%p878_p5), %s201_s8, 4294966784  ;;  %v671_v0 = vmov 0.0|0.0   ;;  %vm672_vm0 = vmmov 0   ;;  %v673_v1 = vmov 0.0   ;;  %v245_v2 = vld [vmem:[%s204_s9] sm:$0xff]  ;;  %v246_v3 = vld [vmem:[%s204_s9 + $0x8] sm:$0xff] }
  0x54   : > { %474 = vmatprep.subr.bf16.mxu0 %v671_v0  ;;  %471 = vmatprep.mubr.msk.f32.mxu0 %vm672_vm0, %v673_v1  ;;  %v247_v4 = vld [vmem:[%s204_s9 + $0x10] sm:$0xff]  ;;  %v475_v5 = vpack.c.bf16 %v246_v3, %v245_v2  ;;  %v248_v6 = vld [vmem:[%s204_s9 + $0x18] sm:$0xff]  ;;  %vm256_vm1 = vcmask 261120   ;;  %p233_p11 = scmp.lt.s32.totalorder %s656_s15, 1 }
  0x55   : > { %v478_v7 = vpack.c.bf16 %v248_v6, %v247_v4  ;;  %v244_v8 = vld [vmem:[#allocation2] sm:$0xff] }
  0x56   : > { %476 = vmatpush3.bf16.msra.mxu0 %v475_v5  ;;  %s887_s15 = smov (!%p233_p11, %s656_s15), 1 }
  0x57   : > { %477 = vmatprep.subr.bf16.mxu0 %v671_v0  ;;  %s235_s22 = scalar_lea.vmem %s863_s2, %s887_s15  ;;  %s453_s27 = sshll.u32 %s887_s15, 3 }
  0x58   : > { %v454_v9 = vld [vmem:[%s235_s22] ss:$0 sm:$0xff]  ;;  %s243_s5 = scalar_lea.vmem %s864_s3, %s453_s27 }
  0x5a   : > { %479 = vmatpush3.bf16.msra.mxu0 %v478_v7 }
  0x5d   : > { %472 = vmatmul.mubr.msk.f32.vlgmr.msra.gmra.mrb[0].mxu0 %vm256_vm1, %v244_v8 }
 0x130   : > { %v326_v10 = vpop.f32.mrb[0].mxu0 }
 0x131   : > { %v327_v11 = vadd.f32 %v454_v9, %v326_v10  ;;  %v473_v12 = vpop.f32.mrb[1].mxu0 }
 0x133   : > { %330 = vst [vmem:[%s243_s5] sm:$0xff] %v327_v11 }
 0x134 PF: > { %s17_s17 = sadd.s32 1, %s664_s17   ;;  %s879_s12 = smov %s648_s13 }
 0x135   : > { %p14_p4 = scmp.ge.s32.totalorder %s17_s17, 4   ;;  %s880_s13 = smov %s652_s14 }
 0x136   : > { %s881_s14 = smov %s792_s4  ;;  %s882_s15 = smov %s660_s16 }
 0x137   : > { %s883_s16 = smov %s885_s11  ;;  %16 = sbr.rel (!%p14_p4) target bundleno = 5 (0x5), region = 81 }
 0x13e   :  { %358 = vsyncpa [#allocation3], 1 }
 0x13f   :  { %360 = vsyncpa [#allocation3 + $0x1], 1 }
 0x140   :  { %361 = vsyncpa [#allocation5], 1 }
 0x141   :  { %363 = vsyncpa [#allocation5 + $0x1], 1 }

</bundles_post_ra>
